<compile_context>
chip_gen: v6e
topology: v6e:2x2x1
jax: 0.10.0
libtpu: 0.0.40
codegen_flags: <defaults>
</compile_context>

<pallas_src>
import functools

import jax
import jax.numpy as jnp
from jax.experimental import pallas as pl
from jax.experimental.pallas import tpu as pltpu


# Below this total size, pallas_call fixed overhead dwarfs the copy -> use XLA.
_XLA_FALLBACK_BYTES = 1 << 20   # 1 MiB
# At/above this per-plane size, split copies into strips / core shards.
_LARGE_PLANE_BYTES = 1 << 20    # 1 MiB per channel plane
_MAX_CORE_SHARDS = 2            # v7x has 2 TCs per chip; harmless elsewhere
_MAX_STRIPS = 4                 # row strips per plane per core shard


@functools.lru_cache(maxsize=1)
def _device_kind() -> str:
    try:
        return jax.devices()[0].device_kind.lower()
    except Exception:  # pragma: no cover - no accelerator visible
        return ""


def _pick_split(height: int, plane_bytes: int) -> tuple[int, int]:
    """Static (core_shards, strips_per_plane) for the DMA decomposition.

    Row boundaries are kept at multiples of 8 (f32 sublane tile) so every DMA
    slice starts on a layout-tile boundary.  v5-family chips keep 3 contiguous
    full-plane descriptors (already saturates ~0.8 TB/s HBM).
    """
    if plane_bytes < _LARGE_PLANE_BYTES or "v5" in _device_kind():
        return 1, 1
    shards = 1
    if (_MAX_CORE_SHARDS > 1 and height % _MAX_CORE_SHARDS == 0
            and (height // _MAX_CORE_SHARDS) % 8 == 0):
        shards = _MAX_CORE_SHARDS
    rows_per_shard = height // shards
    strips = 1
    k = _MAX_STRIPS
    while k > 1:
        if rows_per_shard % k == 0 and (rows_per_shard // k) % 8 == 0:
            strips = k
            break
        k //= 2
    return shards, strips


def _rgb_shuffle_kernel(perm_ref, x_hbm, o_hbm, sem, *, rows_per_shard, strips,
                        single_shard):
    # perm_ref : SMEM (3,) int32 scalar-prefetch ref (the channel permutation).
    # x_hbm    : full (3, H, W) input ref, left in HBM (memory_space=pl.ANY).
    # o_hbm    : full (3, H, W) output ref, left in HBM (memory_space=pl.ANY).
    # sem      : (3, strips) DMA-completion semaphores, one per strip copy.
    rows_per_strip = rows_per_shard // strips
    base = pl.program_id(0) * rows_per_shard
    copies = []
    for c in range(3):                       # static unroll over output planes
        src = perm_ref[c]
        for s in range(strips):              # static unroll over row strips
            if single_shard and strips == 1:
                # Exactly 3 contiguous full-plane descriptors (v5e / small-
                # plane path): no row slicing at all.
                cp = pltpu.make_async_copy(x_hbm.at[src], o_hbm.at[c],
                                           sem.at[c, s])
            else:
                row0 = base + s * rows_per_strip
                cp = pltpu.make_async_copy(
                    x_hbm.at[src, pl.ds(row0, rows_per_strip)],
                    o_hbm.at[c, pl.ds(row0, rows_per_strip)],
                    sem.at[c, s],
                )
            cp.start()
            copies.append(cp)
    for cp in copies:                        # all strip DMAs are in flight
        cp.wait()


@functools.partial(jax.jit, static_argnames=("num_shards", "strips"))
def _rgb_shuffle_pallas(x, perm, *, num_shards, strips):
    C, H, W = x.shape
    rows_per_shard = H // num_shards
    kernel = functools.partial(
        _rgb_shuffle_kernel,
        rows_per_shard=rows_per_shard,
        strips=strips,
        single_shard=(num_shards == 1),
    )
    grid_spec = pltpu.PrefetchScalarGridSpec(
        num_scalar_prefetch=1,
        grid=(num_shards,),
        in_specs=[pl.BlockSpec(memory_space=pl.ANY)],
        out_specs=pl.BlockSpec(memory_space=pl.ANY),
        scratch_shapes=[pltpu.SemaphoreType.DMA((C, strips))],
    )
    bytes_accessed = 2 * C * H * W * x.dtype.itemsize  # read + write
    return pl.pallas_call(
        kernel,
        out_shape=jax.ShapeDtypeStruct((C, H, W), x.dtype),
        grid_spec=grid_spec,
        cost_estimate=pl.CostEstimate(
            flops=0, transcendentals=0, bytes_accessed=bytes_accessed),
        compiler_params=pltpu.CompilerParams(
            dimension_semantics=("parallel",) if num_shards > 1 else ("arbitrary",),
        ),
    )(perm, x)


def rgb_shuffle(x: jax.Array, perm: jax.Array, *, force_pallas: bool = False) -> jax.Array:
    """Return x[perm, :, :] where x is (3, H, W) and perm permutes [0, 3)."""
    C, H, W = x.shape
    assert C == 3, "RGBShuffle expects 3 leading channels"

    perm = perm.astype(jnp.int32)
    # Validate eagerly when the permutation is concrete (traced perms can't be
    # checked without checkify).
    try:
        perm_host = [int(v) for v in jax.device_get(perm)]
    except (jax.errors.ConcretizationTypeError, jax.errors.TracerArrayConversionError):
        perm_host = None
    if perm_host is not None:
        assert sorted(perm_host) == list(range(C)), (
            f"perm must be a permutation of [0, {C}), got {perm_host}")
    # The clamp only guards against an out-of-bounds HBM DMA (process-fatal) for
    # traced perms; it matches JAX's own OOB-clamp semantics for `x[perm]`.
    perm = jnp.clip(perm, 0, C - 1)

    total_bytes = C * H * W * x.dtype.itemsize
    if total_bytes <= _XLA_FALLBACK_BYTES and not force_pallas:
        # Tiny images: plain XLA gather beats the fixed pallas_call overhead.
        return x[perm, :, :]

    num_shards, strips = _pick_split(H, H * W * x.dtype.itemsize)
    return _rgb_shuffle_pallas(x, perm, num_shards=num_shards, strips=strips)


def rgb_shuffle_forward(x: jax.Array, key: jax.Array) -> jax.Array:
    """Full module forward: draw a random permutation of [0,3) and apply it."""
    # TODO(synk): torch.randperm's implicit global RNG has no JAX equivalent;
    # an explicit PRNG key is taken instead.
    perm = jax.random.permutation(key, 3).astype(jnp.int32)
    return rgb_shuffle(x, perm)


if __name__ == "__main__":
    key = jax.random.PRNGKey(0)
    k_x, k_perm, k_big = jax.random.split(key, 3)

    # --- Small shape (module-scale example): dispatches to the XLA gather. ---
    H, W = 16, 16
    x = jax.random.normal(k_x, (3, H, W), dtype=jnp.float32)
    perm = jax.random.permutation(k_perm, 3).astype(jnp.int32)
    ref = x[perm, :, :]

    out_small = jax.block_until_ready(rgb_shuffle(x, perm))
    assert out_small.shape == (3, H, W)
    assert out_small.dtype == x.dtype
    assert jnp.array_equal(out_small, ref), "small-shape (XLA path) mismatch"

    # Same small shape forced through the Pallas path (3 full-plane DMAs).
    out_pallas = jax.block_until_ready(rgb_shuffle(x, perm, force_pallas=True))
    assert jnp.array_equal(out_pallas, ref), "small-shape (Pallas path) mismatch"

    # Key-driven forward, matching the module's own randperm.
    out_fwd = jax.block_until_ready(rgb_shuffle_forward(x, k_perm))
    assert jnp.array_equal(out_fwd, ref), "forward (key-driven) mismatch"

    # --- Medium shape: exercises the strip-split / core-shard Pallas path. ---
    Hb, Wb = 512, 512  # 1 MiB per f32 plane -> strips/shards kick in (non-v5)
    xb = jax.random.normal(k_big, (3, Hb, Wb), dtype=jnp.float32)
    out_big = jax.block_until_ready(rgb_shuffle(xb, perm))
    assert jnp.array_equal(out_big, xb[perm, :, :]), "medium-shape mismatch"

    print("KERNEL_OK")
</pallas_src>

<mosaic_0001>
module attributes {stable_mosaic.version = 11 : i64} {
  func.func @_rgb_shuffle_kernel(%arg0: i32, %arg1: memref<3xi32, #tpu.memory_space<smem>>, %arg2: memref<3x16x16xf32, #tpu.memory_space<any>>, %arg3: memref<3x16x16xf32, #tpu.memory_space<any>>, %arg4: memref<3x1x!tpu.dma_semaphore, #tpu.memory_space<semaphore_mem>>) attributes {dimension_semantics = [#tpu.dimension_semantics<arbitrary>], iteration_bounds = array<i64: 1>, scalar_prefetch = 1 : i64, scratch_operands = 1 : i64, tpu.core_type = #tpu.core_type<tc>, window_params = [{}, {}]} {
    %c0 = arith.constant 0 : index
    %0 = memref.load %arg1[%c0] : memref<3xi32, #tpu.memory_space<smem>>
    %c0_i32 = arith.constant 0 : i32
    %c0_i32_0 = arith.constant 0 : i32
    %c0_i32_1 = arith.constant 0 : i32
    %c0_i32_2 = arith.constant 0 : i32
    %c0_i32_3 = arith.constant 0 : i32
    %1 = tpu.memref_slice %arg2[%0, %c0_i32_2, %c0_i32_3] : memref<3x16x16xf32, #tpu.memory_space<any>> -> memref<1x16x16xf32, #tpu.memory_space<any>>
    %2 = tpu.memref_squeeze %1 : memref<1x16x16xf32, #tpu.memory_space<any>> -> memref<16x16xf32, #tpu.memory_space<any>>
    %c0_i32_4 = arith.constant 0 : i32
    %c0_i32_5 = arith.constant 0 : i32
    %3 = tpu.memref_slice %arg3[%c0_i32, %c0_i32_4, %c0_i32_5] : memref<3x16x16xf32, #tpu.memory_space<any>> -> memref<1x16x16xf32, #tpu.memory_space<any>>
    %4 = tpu.memref_squeeze %3 : memref<1x16x16xf32, #tpu.memory_space<any>> -> memref<16x16xf32, #tpu.memory_space<any>>
    %5 = tpu.memref_slice %arg4[%c0_i32_0, %c0_i32_1] : memref<3x1x!tpu.dma_semaphore, #tpu.memory_space<semaphore_mem>> -> memref<1x1x!tpu.dma_semaphore, #tpu.memory_space<semaphore_mem>>
    %6 = tpu.memref_squeeze %5 : memref<1x1x!tpu.dma_semaphore, #tpu.memory_space<semaphore_mem>> -> memref<!tpu.dma_semaphore, #tpu.memory_space<semaphore_mem>>
    tpu.enqueue_dma source(%2 : memref<16x16xf32, #tpu.memory_space<any>>) target(%4 : memref<16x16xf32, #tpu.memory_space<any>>) target_semaphore(%6 : memref<!tpu.dma_semaphore, #tpu.memory_space<semaphore_mem>>)
    %c1 = arith.constant 1 : index
    %7 = memref.load %arg1[%c1] : memref<3xi32, #tpu.memory_space<smem>>
    %c1_i32 = arith.constant 1 : i32
    %c1_i32_6 = arith.constant 1 : i32
    %c0_i32_7 = arith.constant 0 : i32
    %c0_i32_8 = arith.constant 0 : i32
    %c0_i32_9 = arith.constant 0 : i32
    %8 = tpu.memref_slice %arg2[%7, %c0_i32_8, %c0_i32_9] : memref<3x16x16xf32, #tpu.memory_space<any>> -> memref<1x16x16xf32, #tpu.memory_space<any>>
    %9 = tpu.memref_squeeze %8 : memref<1x16x16xf32, #tpu.memory_space<any>> -> memref<16x16xf32, #tpu.memory_space<any>>
    %c0_i32_10 = arith.constant 0 : i32
    %c0_i32_11 = arith.constant 0 : i32
    %10 = tpu.memref_slice %arg3[%c1_i32, %c0_i32_10, %c0_i32_11] : memref<3x16x16xf32, #tpu.memory_space<any>> -> memref<1x16x16xf32, #tpu.memory_space<any>>
    %11 = tpu.memref_squeeze %10 : memref<1x16x16xf32, #tpu.memory_space<any>> -> memref<16x16xf32, #tpu.memory_space<any>>
    %12 = tpu.memref_slice %arg4[%c1_i32_6, %c0_i32_7] : memref<3x1x!tpu.dma_semaphore, #tpu.memory_space<semaphore_mem>> -> memref<1x1x!tpu.dma_semaphore, #tpu.memory_space<semaphore_mem>>
    %13 = tpu.memref_squeeze %12 : memref<1x1x!tpu.dma_semaphore, #tpu.memory_space<semaphore_mem>> -> memref<!tpu.dma_semaphore, #tpu.memory_space<semaphore_mem>>
    tpu.enqueue_dma source(%9 : memref<16x16xf32, #tpu.memory_space<any>>) target(%11 : memref<16x16xf32, #tpu.memory_space<any>>) target_semaphore(%13 : memref<!tpu.dma_semaphore, #tpu.memory_space<semaphore_mem>>)
    %c2 = arith.constant 2 : index
    %14 = memref.load %arg1[%c2] : memref<3xi32, #tpu.memory_space<smem>>
    %c2_i32 = arith.constant 2 : i32
    %c2_i32_12 = arith.constant 2 : i32
    %c0_i32_13 = arith.constant 0 : i32
    %c0_i32_14 = arith.constant 0 : i32
    %c0_i32_15 = arith.constant 0 : i32
    %15 = tpu.memref_slice %arg2[%14, %c0_i32_14, %c0_i32_15] : memref<3x16x16xf32, #tpu.memory_space<any>> -> memref<1x16x16xf32, #tpu.memory_space<any>>
    %16 = tpu.memref_squeeze %15 : memref<1x16x16xf32, #tpu.memory_space<any>> -> memref<16x16xf32, #tpu.memory_space<any>>
    %c0_i32_16 = arith.constant 0 : i32
    %c0_i32_17 = arith.constant 0 : i32
    %17 = tpu.memref_slice %arg3[%c2_i32, %c0_i32_16, %c0_i32_17] : memref<3x16x16xf32, #tpu.memory_space<any>> -> memref<1x16x16xf32, #tpu.memory_space<any>>
    %18 = tpu.memref_squeeze %17 : memref<1x16x16xf32, #tpu.memory_space<any>> -> memref<16x16xf32, #tpu.memory_space<any>>
    %19 = tpu.memref_slice %arg4[%c2_i32_12, %c0_i32_13] : memref<3x1x!tpu.dma_semaphore, #tpu.memory_space<semaphore_mem>> -> memref<1x1x!tpu.dma_semaphore, #tpu.memory_space<semaphore_mem>>
    %20 = tpu.memref_squeeze %19 : memref<1x1x!tpu.dma_semaphore, #tpu.memory_space<semaphore_mem>> -> memref<!tpu.dma_semaphore, #tpu.memory_space<semaphore_mem>>
    tpu.enqueue_dma source(%16 : memref<16x16xf32, #tpu.memory_space<any>>) target(%18 : memref<16x16xf32, #tpu.memory_space<any>>) target_semaphore(%20 : memref<!tpu.dma_semaphore, #tpu.memory_space<semaphore_mem>>)
    %c0_i32_18 = arith.constant 0 : i32
    %c0_i32_19 = arith.constant 0 : i32
    %c0_i32_20 = arith.constant 0 : i32
    %c0_i32_21 = arith.constant 0 : i32
    %c0_i32_22 = arith.constant 0 : i32
    %21 = tpu.memref_slice %arg2[%0, %c0_i32_21, %c0_i32_22] : memref<3x16x16xf32, #tpu.memory_space<any>> -> memref<1x16x16xf32, #tpu.memory_space<any>>
    %22 = tpu.memref_squeeze %21 : memref<1x16x16xf32, #tpu.memory_space<any>> -> memref<16x16xf32, #tpu.memory_space<any>>
    %c0_i32_23 = arith.constant 0 : i32
    %c0_i32_24 = arith.constant 0 : i32
    %23 = tpu.memref_slice %arg3[%c0_i32_18, %c0_i32_23, %c0_i32_24] : memref<3x16x16xf32, #tpu.memory_space<any>> -> memref<1x16x16xf32, #tpu.memory_space<any>>
    %24 = tpu.memref_squeeze %23 : memref<1x16x16xf32, #tpu.memory_space<any>> -> memref<16x16xf32, #tpu.memory_space<any>>
    %25 = tpu.memref_slice %arg4[%c0_i32_19, %c0_i32_20] : memref<3x1x!tpu.dma_semaphore, #tpu.memory_space<semaphore_mem>> -> memref<1x1x!tpu.dma_semaphore, #tpu.memory_space<semaphore_mem>>
    %26 = tpu.memref_squeeze %25 : memref<1x1x!tpu.dma_semaphore, #tpu.memory_space<semaphore_mem>> -> memref<!tpu.dma_semaphore, #tpu.memory_space<semaphore_mem>>
    tpu.wait_dma2 semaphore(%26 : memref<!tpu.dma_semaphore, #tpu.memory_space<semaphore_mem>>) src(%22 : memref<16x16xf32, #tpu.memory_space<any>>) dst(%24 : memref<16x16xf32, #tpu.memory_space<any>>)
    %c1_i32_25 = arith.constant 1 : i32
    %c1_i32_26 = arith.constant 1 : i32
    %c0_i32_27 = arith.constant 0 : i32
    %c0_i32_28 = arith.constant 0 : i32
    %c0_i32_29 = arith.constant 0 : i32
    %27 = tpu.memref_slice %arg2[%7, %c0_i32_28, %c0_i32_29] : memref<3x16x16xf32, #tpu.memory_space<any>> -> memref<1x16x16xf32, #tpu.memory_space<any>>
    %28 = tpu.memref_squeeze %27 : memref<1x16x16xf32, #tpu.memory_space<any>> -> memref<16x16xf32, #tpu.memory_space<any>>
    %c0_i32_30 = arith.constant 0 : i32
    %c0_i32_31 = arith.constant 0 : i32
    %29 = tpu.memref_slice %arg3[%c1_i32_25, %c0_i32_30, %c0_i32_31] : memref<3x16x16xf32, #tpu.memory_space<any>> -> memref<1x16x16xf32, #tpu.memory_space<any>>
    %30 = tpu.memref_squeeze %29 : memref<1x16x16xf32, #tpu.memory_space<any>> -> memref<16x16xf32, #tpu.memory_space<any>>
    %31 = tpu.memref_slice %arg4[%c1_i32_26, %c0_i32_27] : memref<3x1x!tpu.dma_semaphore, #tpu.memory_space<semaphore_mem>> -> memref<1x1x!tpu.dma_semaphore, #tpu.memory_space<semaphore_mem>>
    %32 = tpu.memref_squeeze %31 : memref<1x1x!tpu.dma_semaphore, #tpu.memory_space<semaphore_mem>> -> memref<!tpu.dma_semaphore, #tpu.memory_space<semaphore_mem>>
    tpu.wait_dma2 semaphore(%32 : memref<!tpu.dma_semaphore, #tpu.memory_space<semaphore_mem>>) src(%28 : memref<16x16xf32, #tpu.memory_space<any>>) dst(%30 : memref<16x16xf32, #tpu.memory_space<any>>)
    %c2_i32_32 = arith.constant 2 : i32
    %c2_i32_33 = arith.constant 2 : i32
    %c0_i32_34 = arith.constant 0 : i32
    %c0_i32_35 = arith.constant 0 : i32
    %c0_i32_36 = arith.constant 0 : i32
    %33 = tpu.memref_slice %arg2[%14, %c0_i32_35, %c0_i32_36] : memref<3x16x16xf32, #tpu.memory_space<any>> -> memref<1x16x16xf32, #tpu.memory_space<any>>
    %34 = tpu.memref_squeeze %33 : memref<1x16x16xf32, #tpu.memory_space<any>> -> memref<16x16xf32, #tpu.memory_space<any>>
    %c0_i32_37 = arith.constant 0 : i32
    %c0_i32_38 = arith.constant 0 : i32
    %35 = tpu.memref_slice %arg3[%c2_i32_32, %c0_i32_37, %c0_i32_38] : memref<3x16x16xf32, #tpu.memory_space<any>> -> memref<1x16x16xf32, #tpu.memory_space<any>>
    %36 = tpu.memref_squeeze %35 : memref<1x16x16xf32, #tpu.memory_space<any>> -> memref<16x16xf32, #tpu.memory_space<any>>
    %37 = tpu.memref_slice %arg4[%c2_i32_33, %c0_i32_34] : memref<3x1x!tpu.dma_semaphore, #tpu.memory_space<semaphore_mem>> -> memref<1x1x!tpu.dma_semaphore, #tpu.memory_space<semaphore_mem>>
    %38 = tpu.memref_squeeze %37 : memref<1x1x!tpu.dma_semaphore, #tpu.memory_space<semaphore_mem>> -> memref<!tpu.dma_semaphore, #tpu.memory_space<semaphore_mem>>
    tpu.wait_dma2 semaphore(%38 : memref<!tpu.dma_semaphore, #tpu.memory_space<semaphore_mem>>) src(%34 : memref<16x16xf32, #tpu.memory_space<any>>) dst(%36 : memref<16x16xf32, #tpu.memory_space<any>>)
    return
  }
}

</mosaic_0001>

<bundles_post_ra>
// kernel: _rgb_shuffle_pallas.1
= control target key start
LH: loop header
LB: loop body
LE: loop exit
PB: predicated region body
PF: predicated region fallthrough
CT: control target
= control target key end

     0   :  { %s165_s0 = inlined_call_operand.vmem [shape: s32[3], index: 0, kind: input, shape index: {}]   ;;  %s166_s1 = inlined_call_operand.hbm [shape: f32[3,16,16], index: 1, kind: input, shape index: {}]   ;;  %s167_s2 = inlined_call_operand.hbm [shape: f32[3,16,16], index: 2, kind: output, shape index: {}]  }
   0x1   :  { %s7_s11 = sshll.u32 %s165_s0, 4  ;;  %s8_s11 = int_to_ptr.vmem [resolvable:$true] %s7_s11 }
   0x2   :  { %s103_s12 = scalar_lea.vmem %s8_s11, 16  ;;  %p108_p1 = scmp.lt.s32.totalorder %s8_s11, %s8_s11 }
   0x3   :  { %p104_p0 = scmp.ne.s32.totalorder %s8_s11, %s103_s12  ;;  %p109_p2 = scmp.lt.s32.totalorder %s103_s12, %s103_s12 }
   0x5   :  { %p110_p3 = por %p109_p2, %p108_p1 }
   0x7   :  { %p111_p4 = pnand %p110_p3, %p104_p0 }
   0x9   :  { %114 = shalt.err (!%p111_p4)  }
   0xa   :  { %s123_s13 = smov [#allocation4]  }
   0xb   :  { %10 = dma.vmem_to_smem %s8_s11, 16, %s123_s13, [#allocation3] }
   0xc   :  { %115 = dma.done.wait [#allocation3], 16 }
   0xd   :  { %116 = vsyncadd [#allocation3], 4294967280 }
   0xe   :  { %12 = sfence }
   0xf   :  { %s13_s14 = sld [smem:[#allocation4]]  ;;  %s124_s0 = smov [#allocation2]  }
  0x10   :  { %s125_s19 = smov 131072   ;;  %s126_s20 = smov 0  }
  0x11   :  { %s28_s26 = scalar_lea.hbm %s167_s2, 256  ;;  %s127_s3 = smov [#allocation2 + $0x1]  }
  0x12   :  { %s41_s7 = scalar_lea.hbm %s167_s2, 512  ;;  %s128_s12 = smov [#allocation2 + $0x2]  }
  0x15   :  { %s94_s15 = sshll.u32 %s13_s14, 8 }
  0x16   :  { %s16_s18 = scalar_lea.hbm %s166_s1, %s94_s15 }
  0x17   :  { %23 = dma.general %s16_s18, 256, %s167_s2, %s124_s0, %s125_s19, [#allocation6], %s126_s20, 0  }
  0x18   :  { %s85_s23 = sld [smem:[#allocation4 + $0x1]] }
  0x1e   :  { %s95_s27 = sshll.u32 %s85_s23, 8 }
  0x1f   :  { %s27_s30 = scalar_lea.hbm %s166_s1, %s95_s27 }
  0x20   :  { %36 = dma.general %s27_s30, 256, %s28_s26, %s127_s3, %s125_s19, [#allocation8], %s126_s20, 0  }
  0x21   :  { %s88_s4 = sld [smem:[#allocation4 + $0x2]] }
  0x27   :  { %s96_s8 = sshll.u32 %s88_s4, 8 }
  0x28   :  { %s40_s11 = scalar_lea.hbm %s166_s1, %s96_s8 }
  0x29   :  { %49 = dma.general %s40_s11, 256, %s41_s7, %s128_s12, %s125_s19, [#allocation10], %s126_s20, 0  }
  0x2a   :  { %117 = dma.done.wait [#allocation2], 256 }
  0x2b   :  { %118 = vsyncadd [#allocation2], 4294967040 }
  0x2c   :  { %119 = dma.done.wait [#allocation2 + $0x1], 256 }
  0x2d   :  { %120 = vsyncadd [#allocation2 + $0x1], 4294967040 }
  0x2e   :  { %121 = dma.done.wait [#allocation2 + $0x2], 256 }
  0x2f   :  { %122 = vsyncadd [#allocation2 + $0x2], 4294967040 }
  0x30   :  { %57 = vsyncmov [#allocation2] }
  0x33   :  { %s58_s13 = vpop.sfrf %57 }
  0x34   :  { %p91_p5 = scmp.ne.s32.totalorder %s58_s13, 0 }
  0x36   :  { %62 = shalt.err (%p91_p5)  }
  0x37   :  { %64 = vsyncmov [#allocation2 + $0x1] }
  0x3a   :  { %s65_s14 = vpop.sfrf %64 }
  0x3b   :  { %p92_p6 = scmp.ne.s32.totalorder %s65_s14, 0 }
  0x3d   :  { %69 = shalt.err (%p92_p6)  }
  0x3e   :  { %71 = vsyncmov [#allocation2 + $0x2] }
  0x41   :  { %s72_s2 = vpop.sfrf %71 }
  0x42   :  { %p93_p7 = scmp.ne.s32.totalorder %s72_s2, 0 }
  0x44   :  { %76 = shalt.err (%p93_p7)  }

</bundles_post_ra>
